<compile_context>
chip_gen: v7x
topology: tpu7x:2x2x1
jax: 0.10.0
libtpu: 0.0.40
codegen_flags: <defaults>
</compile_context>

<pallas_src>
import functools

import jax
import jax.numpy as jnp
from jax.experimental import pallas as pl
from jax.experimental.pallas import tpu as pltpu


# --------------------------- model config (small) ---------------------------
BATCH = 2
SEQ = 8
HIDDEN = 32
NUM_HEADS = 2
HEAD_DIM = HIDDEN // NUM_HEADS
INTERMEDIATE = 64
NUM_LAYERS = 2
VOCAB = 100
MAX_POS = 16
NUM_SENTIMENT_CLASSES = 2
LN_EPS = 1e-5
NCLS_PAD = 128            # lane-dense (padded) classifier output width
ROWS = BATCH * SEQ


# ------------------------------ fused kernel --------------------------------
def _layernorm(x, g, b):
    """Row-wise LayerNorm over the last axis. x:(M,H) f32, g/b:(1,H)."""
    mean = jnp.mean(x, axis=-1, keepdims=True)
    var = jnp.mean((x - mean) ** 2, axis=-1, keepdims=True)
    inv = jax.lax.rsqrt(var + LN_EPS)
    return (x - mean) * inv * g + b


def _encoder_kernel(emb_ref, bias_ref, embln_ref,
                    wqkv_ref, bqkv_ref, wo_ref, bo_ref, ln_ref,
                    w1_ref, b1_ref, w2_ref, b2_ref,
                    wcls_ref, bcls_ref,
                    logits_ref,
                    x_scratch, ctx_scratch):
    """One grid step == one encoder layer; residual stream stays in VMEM."""
    layer = pl.program_id(0)
    H, Dh = HIDDEN, HEAD_DIM
    scale = 1.0 / (float(HEAD_DIM) ** 0.5)

    # Layer 0: embedding LayerNorm into the resident residual stream.
    @pl.when(layer == 0)
    def _():
        e = emb_ref[...].astype(jnp.float32)
        embln = embln_ref[...].astype(jnp.float32)            # (2, H)
        x_scratch[...] = _layernorm(e, embln[0:1, :], embln[1:2, :])

    x = x_scratch[...]                                         # (ROWS, H) f32

    # Fused QKV projection: one (ROWS, H) @ (H, 3H) MXU push.
    qkv = (jnp.dot(x, wqkv_ref[0], preferred_element_type=jnp.float32)
           + bqkv_ref[0])                                      # (ROWS, 3H)

    # Self-attention, all heads in-kernel on static 2-D slices.
    for b in range(BATCH):
        r0 = b * SEQ
        bias_b = bias_ref[b:b + 1, :]                          # (1, SEQ) additive
        for h in range(NUM_HEADS):
            c0 = h * Dh
            q = qkv[r0:r0 + SEQ, c0:c0 + Dh]                   # (SEQ, Dh)
            k = qkv[r0:r0 + SEQ, H + c0:H + c0 + Dh]
            v = qkv[r0:r0 + SEQ, 2 * H + c0:2 * H + c0 + Dh]
            # q @ k^T via dot_general (contract last dims; no explicit transpose).
            s = jax.lax.dot_general(
                q, k, (((1,), (1,)), ((), ())),
                preferred_element_type=jnp.float32) * scale + bias_b
            p = jnp.exp(s - jnp.max(s, axis=-1, keepdims=True))
            p = p * pl.reciprocal(jnp.sum(p, axis=-1, keepdims=True), approx=True)
            ctx_scratch[r0:r0 + SEQ, c0:c0 + Dh] = jnp.dot(
                p, v, preferred_element_type=jnp.float32)

    attn_out = (jnp.dot(ctx_scratch[...], wo_ref[0],
                        preferred_element_type=jnp.float32) + bo_ref[0])

    lnp = ln_ref[0]                                            # (4, H)
    x = _layernorm(x + attn_out, lnp[0:1, :], lnp[1:2, :])     # post-attn LN

    # Fused FFN.
    hmid = jnp.dot(x, w1_ref[0], preferred_element_type=jnp.float32) + b1_ref[0]
    # TODO(synk): HF XLM-R uses exact erf GELU; tanh approximation used here.
    hmid = jax.nn.gelu(hmid, approximate=True)
    ffn_out = jnp.dot(hmid, w2_ref[0], preferred_element_type=jnp.float32) + b2_ref[0]
    x = _layernorm(x + ffn_out, lnp[2:3, :], lnp[3:4, :])      # post-FFN LN

    x_scratch[...] = x

    # Final layer: classifier on all rows with a lane-dense (H, 128) weight
    # (unmasked 128-lane stores); CLS rows / real classes sliced in wrapper.
    @pl.when(layer == pl.num_programs(0) - 1)
    def _():
        logits_ref[...] = (
            jnp.dot(x, wcls_ref[...], preferred_element_type=jnp.float32)
            + bcls_ref[...]).astype(logits_ref.dtype)


# --------------------------- parameter construction --------------------------
def init_params(key):
    def normal(key, shape, scale=0.02):
        return scale * jax.random.normal(key, shape, dtype=jnp.float32)

    keys = iter(jax.random.split(key, 128))
    params = {
        "word_emb": normal(next(keys), (VOCAB, HIDDEN)),
        "pos_emb": normal(next(keys), (MAX_POS, HIDDEN)),
        "type_emb": normal(next(keys), (1, HIDDEN)),
        "emb_ln_g": jnp.ones((HIDDEN,), jnp.float32),
        "emb_ln_b": jnp.zeros((HIDDEN,), jnp.float32),
        "layers": [],
        "classifiers": {},
    }
    for _ in range(NUM_LAYERS):
        params["layers"].append({
            "wq": normal(next(keys), (HIDDEN, HIDDEN)),
            "bq": jnp.zeros((HIDDEN,), jnp.float32),
            "wk": normal(next(keys), (HIDDEN, HIDDEN)),
            "bk": jnp.zeros((HIDDEN,), jnp.float32),
            "wv": normal(next(keys), (HIDDEN, HIDDEN)),
            "bv": jnp.zeros((HIDDEN,), jnp.float32),
            "wo": normal(next(keys), (HIDDEN, HIDDEN)),
            "bo": jnp.zeros((HIDDEN,), jnp.float32),
            "ln1_g": jnp.ones((HIDDEN,), jnp.float32),
            "ln1_b": jnp.zeros((HIDDEN,), jnp.float32),
            "w1": normal(next(keys), (HIDDEN, INTERMEDIATE)),
            "b1": jnp.zeros((INTERMEDIATE,), jnp.float32),
            "w2": normal(next(keys), (INTERMEDIATE, HIDDEN)),
            "b2": jnp.zeros((HIDDEN,), jnp.float32),
            "ln2_g": jnp.ones((HIDDEN,), jnp.float32),
            "ln2_b": jnp.zeros((HIDDEN,), jnp.float32),
        })
    for task, n_cls in (("hate", 2), ("offensive", 2),
                        ("sentiment", NUM_SENTIMENT_CLASSES)):
        params["classifiers"][task] = (
            normal(next(keys), (HIDDEN, n_cls)),
            jnp.zeros((n_cls,), jnp.float32),
        )
    return params


# ------------------------------- forward pass --------------------------------
def multitask_xlmr_forward(params, input_ids, attention_mask, task):
    B, S = input_ids.shape
    assert B == BATCH and S == SEQ
    H, I, L = HIDDEN, INTERMEDIATE, NUM_LAYERS

    # Embedding gather + sum (table lookup is glue in plain JAX).
    emb = (params["word_emb"][input_ids]
           + params["pos_emb"][jnp.arange(S)][None, :, :]
           + params["type_emb"][0][None, None, :]).reshape(B * S, H)

    # Additive attention bias (kept in f32).
    bias = (1.0 - attention_mask.astype(jnp.float32)) * -1e9        # (B, S)

    embln = jnp.stack([params["emb_ln_g"], params["emb_ln_b"]], axis=0)   # (2, H)

    # Stack per-layer weights along a leading layer axis for the fused grid.
    def stack(name):
        return jnp.stack([lp[name] for lp in params["layers"]], axis=0)

    wqkv = jnp.stack(
        [jnp.concatenate([lp["wq"], lp["wk"], lp["wv"]], axis=1)
         for lp in params["layers"]], axis=0)                         # (L, H, 3H)
    bqkv = jnp.stack(
        [jnp.concatenate([lp["bq"], lp["bk"], lp["bv"]], axis=0)[None, :]
         for lp in params["layers"]], axis=0)                         # (L, 1, 3H)
    wo = stack("wo")                                                  # (L, H, H)
    bo = stack("bo")[:, None, :]                                      # (L, 1, H)
    ln = jnp.stack(
        [jnp.stack([lp["ln1_g"], lp["ln1_b"], lp["ln2_g"], lp["ln2_b"]], axis=0)
         for lp in params["layers"]], axis=0)                         # (L, 4, H)
    w1 = stack("w1")                                                  # (L, H, I)
    b1 = stack("b1")[:, None, :]                                      # (L, 1, I)
    w2 = stack("w2")                                                  # (L, I, H)
    b2 = stack("b2")[:, None, :]                                      # (L, 1, H)

    # Selected task head, zero-padded to a lane-dense 128-wide output slab.
    w_cls, b_cls = params["classifiers"][task]
    n_cls = w_cls.shape[1]
    wcls = jnp.zeros((H, NCLS_PAD), jnp.float32).at[:, :n_cls].set(w_cls)
    bcls = jnp.zeros((1, NCLS_PAD), jnp.float32).at[:, :n_cls].set(b_cls)

    grid_spec = pltpu.PrefetchScalarGridSpec(
        num_scalar_prefetch=0,
        grid=(L,),
        in_specs=[
            pl.BlockSpec((B * S, H), lambda l: (0, 0)),               # emb
            pl.BlockSpec((B, S), lambda l: (0, 0)),                   # mask bias
            pl.BlockSpec((2, H), lambda l: (0, 0)),                   # emb LN g/b
            pl.BlockSpec((1, H, 3 * H), lambda l: (l, 0, 0)),         # wqkv
            pl.BlockSpec((1, 1, 3 * H), lambda l: (l, 0, 0)),         # bqkv
            pl.BlockSpec((1, H, H), lambda l: (l, 0, 0)),             # wo
            pl.BlockSpec((1, 1, H), lambda l: (l, 0, 0)),             # bo
            pl.BlockSpec((1, 4, H), lambda l: (l, 0, 0)),             # ln1/ln2 g/b
            pl.BlockSpec((1, H, I), lambda l: (l, 0, 0)),             # w1
            pl.BlockSpec((1, 1, I), lambda l: (l, 0, 0)),             # b1
            pl.BlockSpec((1, I, H), lambda l: (l, 0, 0)),             # w2
            pl.BlockSpec((1, 1, H), lambda l: (l, 0, 0)),             # b2
            pl.BlockSpec((H, NCLS_PAD), lambda l: (0, 0)),            # wcls (padded)
            pl.BlockSpec((1, NCLS_PAD), lambda l: (0, 0)),            # bcls (padded)
        ],
        out_specs=pl.BlockSpec((B * S, NCLS_PAD), lambda l: (0, 0)),
        scratch_shapes=[
            pltpu.VMEM((B * S, H), jnp.float32),    # residual stream (persists)
            pltpu.VMEM((B * S, H), jnp.float32),    # attention context
        ],
    )

    logits_full = pl.pallas_call(
        _encoder_kernel,
        out_shape=jax.ShapeDtypeStruct((B * S, NCLS_PAD), jnp.float32),
        grid_spec=grid_spec,
        compiler_params=pltpu.CompilerParams(
            dimension_semantics=("arbitrary",)),     # layer axis is sequential
    )(emb, bias, embln, wqkv, bqkv, wo, bo, ln, w1, b1, w2, b2, wcls, bcls)

    # CLS token is row b*S of each batch; nn.Dropout(0.3) is identity at eval.
    return logits_full[0::S, :n_cls]                                  # (B, n_cls)


# ------------------------------------ main ------------------------------------
if __name__ == "__main__":
    key = jax.random.PRNGKey(0)
    pkey, ikey = jax.random.split(key)
    params = init_params(pkey)

    input_ids = jax.random.randint(ikey, (BATCH, SEQ), 0, VOCAB, dtype=jnp.int32)
    attention_mask = jnp.array(
        [[1, 1, 1, 1, 1, 1, 0, 0],
         [1, 1, 1, 1, 1, 1, 1, 1]], dtype=jnp.int32)

    fwd = jax.jit(functools.partial(multitask_xlmr_forward, task="sentiment"))
    logits = fwd(params, input_ids, attention_mask)
    jax.block_until_ready(logits)

    assert logits.shape == (BATCH, NUM_SENTIMENT_CLASSES)
    print("KERNEL_OK")
</pallas_src>

<mosaic_0001>
module attributes {stable_mosaic.version = 11 : i64} {
  func.func @_encoder_kernel(%arg0: i32, %arg1: memref<16x32xf32, #tpu.memory_space<vmem>>, %arg2: memref<2x8xf32, #tpu.memory_space<vmem>>, %arg3: memref<2x32xf32, #tpu.memory_space<vmem>>, %arg4: memref<1x32x96xf32, #tpu.memory_space<vmem>>, %arg5: memref<1x1x96xf32, #tpu.memory_space<vmem>>, %arg6: memref<1x32x32xf32, #tpu.memory_space<vmem>>, %arg7: memref<1x1x32xf32, #tpu.memory_space<vmem>>, %arg8: memref<1x4x32xf32, #tpu.memory_space<vmem>>, %arg9: memref<1x32x64xf32, #tpu.memory_space<vmem>>, %arg10: memref<1x1x64xf32, #tpu.memory_space<vmem>>, %arg11: memref<1x64x32xf32, #tpu.memory_space<vmem>>, %arg12: memref<1x1x32xf32, #tpu.memory_space<vmem>>, %arg13: memref<32x128xf32, #tpu.memory_space<vmem>>, %arg14: memref<1x128xf32, #tpu.memory_space<vmem>>, %arg15: memref<16x128xf32, #tpu.memory_space<vmem>>, %arg16: memref<16x32xf32, #tpu.memory_space<vmem>>, %arg17: memref<16x32xf32, #tpu.memory_space<vmem>>) attributes {dimension_semantics = [#tpu.dimension_semantics<arbitrary>], iteration_bounds = array<i64: 2>, scalar_prefetch = 0 : i64, scratch_operands = 2 : i64, tpu.core_type = #tpu.core_type<tc>, window_params = [{pipeline_mode = #tpu.pipeline_mode<synchronous>, transform_indices = @transform_0, window_bounds = array<i64: 16, 32>}, {pipeline_mode = #tpu.pipeline_mode<synchronous>, transform_indices = @transform_1, window_bounds = array<i64: 2, 8>}, {pipeline_mode = #tpu.pipeline_mode<synchronous>, transform_indices = @transform_2, window_bounds = array<i64: 2, 32>}, {transform_indices = @transform_3, window_bounds = array<i64: 1, 32, 96>}, {transform_indices = @transform_4, window_bounds = array<i64: 1, 1, 96>}, {transform_indices = @transform_5, window_bounds = array<i64: 1, 32, 32>}, {transform_indices = @transform_6, window_bounds = array<i64: 1, 1, 32>}, {transform_indices = @transform_7, window_bounds = array<i64: 1, 4, 32>}, {transform_indices = @transform_8, window_bounds = array<i64: 1, 32, 64>}, {transform_indices = @transform_9, window_bounds = array<i64: 1, 1, 64>}, {transform_indices = @transform_10, window_bounds = array<i64: 1, 64, 32>}, {transform_indices = @transform_11, window_bounds = array<i64: 1, 1, 32>}, {pipeline_mode = #tpu.pipeline_mode<synchronous>, transform_indices = @transform_12, window_bounds = array<i64: 32, 128>}, {pipeline_mode = #tpu.pipeline_mode<synchronous>, transform_indices = @transform_13, window_bounds = array<i64: 1, 128>}, {pipeline_mode = #tpu.pipeline_mode<synchronous>, transform_indices = @transform_14, window_bounds = array<i64: 16, 128>}]} {
    %c0_i32 = arith.constant 0 : i32
    %0 = arith.cmpi eq, %arg0, %c0_i32 : i32
    %1 = arith.extui %0 : i1 to i32
    %c0_i32_0 = arith.constant 0 : i32
    %2 = arith.cmpi ne, %1, %c0_i32_0 : i32
    scf.if %2 {
      %c0_80 = arith.constant 0 : index
      %c0_81 = arith.constant 0 : index
      %184 = vector.load %arg1[%c0_80, %c0_81] : memref<16x32xf32, #tpu.memory_space<vmem>>, vector<16x32xf32>
      %c0_82 = arith.constant 0 : index
      %c0_83 = arith.constant 0 : index
      %185 = vector.load %arg3[%c0_82, %c0_83] : memref<2x32xf32, #tpu.memory_space<vmem>>, vector<2x32xf32>
      %186 = vector.extract_strided_slice %185 {offsets = [0, 0], sizes = [1, 32], strides = [1, 1]} : vector<2x32xf32> to vector<1x32xf32>
      %187 = vector.extract_strided_slice %185 {offsets = [1, 0], sizes = [1, 32], strides = [1, 1]} : vector<2x32xf32> to vector<1x32xf32>
      %cst_84 = arith.constant dense<0.000000e+00> : vector<16xf32>
      %188 = vector.multi_reduction <add>, %184, %cst_84 [1] : vector<16x32xf32> to vector<16xf32>
      %189 = vector.shape_cast %188 : vector<16xf32> to vector<16x1xf32>
      %cst_85 = arith.constant 3.200000e+01 : f32
      %190 = vector.broadcast %cst_85 : f32 to vector<16x1xf32>
      %191 = arith.divf %189, %190 : vector<16x1xf32>
      %192 = vector.broadcast %191 : vector<16x1xf32> to vector<16x32xf32>
      %193 = arith.subf %184, %192 : vector<16x32xf32>
      %194 = arith.mulf %193, %193 : vector<16x32xf32>
      %cst_86 = arith.constant dense<0.000000e+00> : vector<16xf32>
      %195 = vector.multi_reduction <add>, %194, %cst_86 [1] : vector<16x32xf32> to vector<16xf32>
      %196 = vector.shape_cast %195 : vector<16xf32> to vector<16x1xf32>
      %cst_87 = arith.constant 3.200000e+01 : f32
      %197 = vector.broadcast %cst_87 : f32 to vector<16x1xf32>
      %198 = arith.divf %196, %197 : vector<16x1xf32>
      %cst_88 = arith.constant 9.99999974E-6 : f32
      %199 = vector.broadcast %cst_88 : f32 to vector<16x1xf32>
      %200 = arith.addf %198, %199 : vector<16x1xf32>
      %201 = math.rsqrt %200 : vector<16x1xf32>
      %202 = vector.broadcast %191 : vector<16x1xf32> to vector<16x32xf32>
      %203 = arith.subf %184, %202 : vector<16x32xf32>
      %204 = vector.broadcast %201 : vector<16x1xf32> to vector<16x32xf32>
      %205 = arith.mulf %203, %204 : vector<16x32xf32>
      %206 = vector.broadcast %186 : vector<1x32xf32> to vector<16x32xf32>
      %207 = arith.mulf %205, %206 : vector<16x32xf32>
      %208 = vector.broadcast %187 : vector<1x32xf32> to vector<16x32xf32>
      %209 = arith.addf %207, %208 : vector<16x32xf32>
      %c0_89 = arith.constant 0 : index
      %c0_90 = arith.constant 0 : index
      %210 = vector.load %arg16[%c0_89, %c0_90] : memref<16x32xf32, #tpu.memory_space<vmem>>, vector<16x32xf32>
      tpu.vector_store %arg16[%c0_89, %c0_90], %209 {strides = array<i32>} : memref<16x32xf32, #tpu.memory_space<vmem>>, vector<16x32xf32>,
    } else {
    }
    %c0 = arith.constant 0 : index
    %c0_1 = arith.constant 0 : index
    %3 = vector.load %arg16[%c0, %c0_1] : memref<16x32xf32, #tpu.memory_space<vmem>>, vector<16x32xf32>
    %c0_2 = arith.constant 0 : index
    %c0_3 = arith.constant 0 : index
    %c0_4 = arith.constant 0 : index
    %4 = vector.load %arg4[%c0_2, %c0_3, %c0_4] : memref<1x32x96xf32, #tpu.memory_space<vmem>>, vector<1x32x96xf32>
    %5 = vector.shape_cast %4 : vector<1x32x96xf32> to vector<32x96xf32>
    %cst = arith.constant dense<0.000000e+00> : vector<16x96xf32>
    %6 = tpu.matmul %3, %5, %cst {dimension_numbers = #tpu.dot_dimension_numbers<[1], [0], [0], [1], [0, 0, 1, 1], [], []>} : vector<16x32xf32>, vector<32x96xf32>, vector<16x96xf32> -> vector<16x96xf32>
    %c0_5 = arith.constant 0 : index
    %c0_6 = arith.constant 0 : index
    %c0_7 = arith.constant 0 : index
    %7 = vector.load %arg5[%c0_5, %c0_6, %c0_7] : memref<1x1x96xf32, #tpu.memory_space<vmem>>, vector<1x1x96xf32>
    %8 = vector.shape_cast %7 : vector<1x1x96xf32> to vector<1x96xf32>
    %9 = vector.broadcast %8 : vector<1x96xf32> to vector<16x96xf32>
    %10 = arith.addf %6, %9 : vector<16x96xf32>
    %c0_8 = arith.constant 0 : index
    %c0_9 = arith.constant 0 : index
    %11 = vector.load %arg2[%c0_8, %c0_9] : memref<2x8xf32, #tpu.memory_space<vmem>>, vector<1x8xf32>
    %12 = vector.extract_strided_slice %10 {offsets = [0, 0], sizes = [8, 16], strides = [1, 1]} : vector<16x96xf32> to vector<8x16xf32>
    %13 = vector.extract_strided_slice %10 {offsets = [0, 32], sizes = [8, 16], strides = [1, 1]} : vector<16x96xf32> to vector<8x16xf32>
    %14 = vector.extract_strided_slice %10 {offsets = [0, 64], sizes = [8, 16], strides = [1, 1]} : vector<16x96xf32> to vector<8x16xf32>
    %cst_10 = arith.constant dense<0.000000e+00> : vector<8x8xf32>
    %15 = tpu.matmul %12, %13, %cst_10 {dimension_numbers = #tpu.dot_dimension_numbers<[1], [1], [0], [0], [0, 0, 1, 0], [], []>} : vector<8x16xf32>, vector<8x16xf32>, vector<8x8xf32> -> vector<8x8xf32>
    %cst_11 = arith.constant 2.500000e-01 : f32
    %16 = vector.broadcast %cst_11 : f32 to vector<8x8xf32>
    %17 = arith.mulf %15, %16 : vector<8x8xf32>
    %18 = vector.broadcast %11 : vector<1x8xf32> to vector<8x8xf32>
    %19 = arith.addf %17, %18 : vector<8x8xf32>
    %cst_12 = arith.constant dense<0xFF800000> : vector<8xf32>
    %20 = vector.multi_reduction <maximumf>, %19, %cst_12 [1] : vector<8x8xf32> to vector<8xf32>
    %21 = vector.shape_cast %20 : vector<8xf32> to vector<8x1xf32>
    %22 = vector.broadcast %21 : vector<8x1xf32> to vector<8x8xf32>
    %23 = arith.subf %19, %22 : vector<8x8xf32>
    %24 = math.exp %23 : vector<8x8xf32>
    %cst_13 = arith.constant dense<0.000000e+00> : vector<8xf32>
    %25 = vector.multi_reduction <add>, %24, %cst_13 [1] : vector<8x8xf32> to vector<8xf32>
    %26 = vector.shape_cast %25 : vector<8xf32> to vector<8x1xf32>
    %27 = tpu.reciprocal %26 {approx = true} : vector<8x1xf32> -> vector<8x1xf32>
    %28 = vector.broadcast %27 : vector<8x1xf32> to vector<8x8xf32>
    %29 = arith.mulf %24, %28 : vector<8x8xf32>
    %cst_14 = arith.constant dense<0.000000e+00> : vector<8x16xf32>
    %30 = tpu.matmul %29, %14, %cst_14 {dimension_numbers = #tpu.dot_dimension_numbers<[1], [0], [0], [1], [0, 0, 1, 1], [], []>} : vector<8x8xf32>, vector<8x16xf32>, vector<8x16xf32> -> vector<8x16xf32>
    %c0_15 = arith.constant 0 : index
    %c0_16 = arith.constant 0 : index
    %31 = vector.load %arg17[%c0_15, %c0_16] : memref<16x32xf32, #tpu.memory_space<vmem>>, vector<8x16xf32>
    tpu.vector_store %arg17[%c0_15, %c0_16], %30 {strides = array<i32>} : memref<16x32xf32, #tpu.memory_space<vmem>>, vector<8x16xf32>,
    %32 = vector.extract_strided_slice %10 {offsets = [0, 16], sizes = [8, 16], strides = [1, 1]} : vector<16x96xf32> to vector<8x16xf32>
    %33 = vector.extract_strided_slice %10 {offsets = [0, 48], sizes = [8, 16], strides = [1, 1]} : vector<16x96xf32> to vector<8x16xf32>
    %34 = vector.extract_strided_slice %10 {offsets = [0, 80], sizes = [8, 16], strides = [1, 1]} : vector<16x96xf32> to vector<8x16xf32>
    %cst_17 = arith.constant dense<0.000000e+00> : vector<8x8xf32>
    %35 = tpu.matmul %32, %33, %cst_17 {dimension_numbers = #tpu.dot_dimension_numbers<[1], [1], [0], [0], [0, 0, 1, 0], [], []>} : vector<8x16xf32>, vector<8x16xf32>, vector<8x8xf32> -> vector<8x8xf32>
    %cst_18 = arith.constant 2.500000e-01 : f32
    %36 = vector.broadcast %cst_18 : f32 to vector<8x8xf32>
    %37 = arith.mulf %35, %36 : vector<8x8xf32>
    %38 = vector.broadcast %11 : vector<1x8xf32> to vector<8x8xf32>
    %39 = arith.addf %37, %38 : vector<8x8xf32>
    %cst_19 = arith.constant dense<0xFF800000> : vector<8xf32>
    %40 = vector.multi_reduction <maximumf>, %39, %cst_19 [1] : vector<8x8xf32> to vector<8xf32>
    %41 = vector.shape_cast %40 : vector<8xf32> to vector<8x1xf32>
    %42 = vector.broadcast %41 : vector<8x1xf32> to vector<8x8xf32>
    %43 = arith.subf %39, %42 : vector<8x8xf32>
    %44 = math.exp %43 : vector<8x8xf32>
    %cst_20 = arith.constant dense<0.000000e+00> : vector<8xf32>
    %45 = vector.multi_reduction <add>, %44, %cst_20 [1] : vector<8x8xf32> to vector<8xf32>
    %46 = vector.shape_cast %45 : vector<8xf32> to vector<8x1xf32>
    %47 = tpu.reciprocal %46 {approx = true} : vector<8x1xf32> -> vector<8x1xf32>
    %48 = vector.broadcast %47 : vector<8x1xf32> to vector<8x8xf32>
    %49 = arith.mulf %44, %48 : vector<8x8xf32>
    %cst_21 = arith.constant dense<0.000000e+00> : vector<8x16xf32>
    %50 = tpu.matmul %49, %34, %cst_21 {dimension_numbers = #tpu.dot_dimension_numbers<[1], [0], [0], [1], [0, 0, 1, 1], [], []>} : vector<8x8xf32>, vector<8x16xf32>, vector<8x16xf32> -> vector<8x16xf32>
    %c0_22 = arith.constant 0 : index
    %c16 = arith.constant 16 : index
    %51 = vector.load %arg17[%c0_22, %c16] : memref<16x32xf32, #tpu.memory_space<vmem>>, vector<8x16xf32>
    tpu.vector_store %arg17[%c0_22, %c16], %50 {strides = array<i32>} : memref<16x32xf32, #tpu.memory_space<vmem>>, vector<8x16xf32>,
    %c1 = arith.constant 1 : index
    %c0_23 = arith.constant 0 : index
    %52 = vector.load %arg2[%c1, %c0_23] : memref<2x8xf32, #tpu.memory_space<vmem>>, vector<1x8xf32>
    %53 = vector.extract_strided_slice %10 {offsets = [8, 0], sizes = [8, 16], strides = [1, 1]} : vector<16x96xf32> to vector<8x16xf32>
    %54 = vector.extract_strided_slice %10 {offsets = [8, 32], sizes = [8, 16], strides = [1, 1]} : vector<16x96xf32> to vector<8x16xf32>
    %55 = vector.extract_strided_slice %10 {offsets = [8, 64], sizes = [8, 16], strides = [1, 1]} : vector<16x96xf32> to vector<8x16xf32>
    %cst_24 = arith.constant dense<0.000000e+00> : vector<8x8xf32>
    %56 = tpu.matmul %53, %54, %cst_24 {dimension_numbers = #tpu.dot_dimension_numbers<[1], [1], [0], [0], [0, 0, 1, 0], [], []>} : vector<8x16xf32>, vector<8x16xf32>, vector<8x8xf32> -> vector<8x8xf32>
    %cst_25 = arith.constant 2.500000e-01 : f32
    %57 = vector.broadcast %cst_25 : f32 to vector<8x8xf32>
    %58 = arith.mulf %56, %57 : vector<8x8xf32>
    %59 = vector.broadcast %52 : vector<1x8xf32> to vector<8x8xf32>
    %60 = arith.addf %58, %59 : vector<8x8xf32>
    %cst_26 = arith.constant dense<0xFF800000> : vector<8xf32>
    %61 = vector.multi_reduction <maximumf>, %60, %cst_26 [1] : vector<8x8xf32> to vector<8xf32>
    %62 = vector.shape_cast %61 : vector<8xf32> to vector<8x1xf32>
    %63 = vector.broadcast %62 : vector<8x1xf32> to vector<8x8xf32>
    %64 = arith.subf %60, %63 : vector<8x8xf32>
    %65 = math.exp %64 : vector<8x8xf32>
    %cst_27 = arith.constant dense<0.000000e+00> : vector<8xf32>
    %66 = vector.multi_reduction <add>, %65, %cst_27 [1] : vector<8x8xf32> to vector<8xf32>
    %67 = vector.shape_cast %66 : vector<8xf32> to vector<8x1xf32>
    %68 = tpu.reciprocal %67 {approx = true} : vector<8x1xf32> -> vector<8x1xf32>
    %69 = vector.broadcast %68 : vector<8x1xf32> to vector<8x8xf32>
    %70 = arith.mulf %65, %69 : vector<8x8xf32>
    %cst_28 = arith.constant dense<0.000000e+00> : vector<8x16xf32>
    %71 = tpu.matmul %70, %55, %cst_28 {dimension_numbers = #tpu.dot_dimension_numbers<[1], [0], [0], [1], [0, 0, 1, 1], [], []>} : vector<8x8xf32>, vector<8x16xf32>, vector<8x16xf32> -> vector<8x16xf32>
    %c8 = arith.constant 8 : index
    %c0_29 = arith.constant 0 : index
    %72 = vector.load %arg17[%c8, %c0_29] : memref<16x32xf32, #tpu.memory_space<vmem>>, vector<8x16xf32>
    tpu.vector_store %arg17[%c8, %c0_29], %71 {strides = array<i32>} : memref<16x32xf32, #tpu.memory_space<vmem>>, vector<8x16xf32>,
    %73 = vector.extract_strided_slice %10 {offsets = [8, 16], sizes = [8, 16], strides = [1, 1]} : vector<16x96xf32> to vector<8x16xf32>
    %74 = vector.extract_strided_slice %10 {offsets = [8, 48], sizes = [8, 16], strides = [1, 1]} : vector<16x96xf32> to vector<8x16xf32>
    %75 = vector.extract_strided_slice %10 {offsets = [8, 80], sizes = [8, 16], strides = [1, 1]} : vector<16x96xf32> to vector<8x16xf32>
    %cst_30 = arith.constant dense<0.000000e+00> : vector<8x8xf32>
    %76 = tpu.matmul %73, %74, %cst_30 {dimension_numbers = #tpu.dot_dimension_numbers<[1], [1], [0], [0], [0, 0, 1, 0], [], []>} : vector<8x16xf32>, vector<8x16xf32>, vector<8x8xf32> -> vector<8x8xf32>
    %cst_31 = arith.constant 2.500000e-01 : f32
    %77 = vector.broadcast %cst_31 : f32 to vector<8x8xf32>
    %78 = arith.mulf %76, %77 : vector<8x8xf32>
    %79 = vector.broadcast %52 : vector<1x8xf32> to vector<8x8xf32>
    %80 = arith.addf %78, %79 : vector<8x8xf32>
    %cst_32 = arith.constant dense<0xFF800000> : vector<8xf32>
    %81 = vector.multi_reduction <maximumf>, %80, %cst_32 [1] : vector<8x8xf32> to vector<8xf32>
    %82 = vector.shape_cast %81 : vector<8xf32> to vector<8x1xf32>
    %83 = vector.broadcast %82 : vector<8x1xf32> to vector<8x8xf32>
    %84 = arith.subf %80, %83 : vector<8x8xf32>
    %85 = math.exp %84 : vector<8x8xf32>
    %cst_33 = arith.constant dense<0.000000e+00> : vector<8xf32>
    %86 = vector.multi_reduction <add>, %85, %cst_33 [1] : vector<8x8xf32> to vector<8xf32>
    %87 = vector.shape_cast %86 : vector<8xf32> to vector<8x1xf32>
    %88 = tpu.reciprocal %87 {approx = true} : vector<8x1xf32> -> vector<8x1xf32>
    %89 = vector.broadcast %88 : vector<8x1xf32> to vector<8x8xf32>
    %90 = arith.mulf %85, %89 : vector<8x8xf32>
    %cst_34 = arith.constant dense<0.000000e+00> : vector<8x16xf32>
    %91 = tpu.matmul %90, %75, %cst_34 {dimension_numbers = #tpu.dot_dimension_numbers<[1], [0], [0], [1], [0, 0, 1, 1], [], []>} : vector<8x8xf32>, vector<8x16xf32>, vector<8x16xf32> -> vector<8x16xf32>
    %c8_35 = arith.constant 8 : index
    %c16_36 = arith.constant 16 : index
    %92 = vector.load %arg17[%c8_35, %c16_36] : memref<16x32xf32, #tpu.memory_space<vmem>>, vector<8x16xf32>
    tpu.vector_store %arg17[%c8_35, %c16_36], %91 {strides = array<i32>} : memref<16x32xf32, #tpu.memory_space<vmem>>, vector<8x16xf32>,
    %c0_37 = arith.constant 0 : index
    %c0_38 = arith.constant 0 : index
    %93 = vector.load %arg17[%c0_37, %c0_38] : memref<16x32xf32, #tpu.memory_space<vmem>>, vector<16x32xf32>
    %c0_39 = arith.constant 0 : index
    %c0_40 = arith.constant 0 : index
    %c0_41 = arith.constant 0 : index
    %94 = vector.load %arg6[%c0_39, %c0_40, %c0_41] : memref<1x32x32xf32, #tpu.memory_space<vmem>>, vector<1x32x32xf32>
    %95 = vector.shape_cast %94 : vector<1x32x32xf32> to vector<32x32xf32>
    %cst_42 = arith.constant dense<0.000000e+00> : vector<16x32xf32>
    %96 = tpu.matmul %93, %95, %cst_42 {dimension_numbers = #tpu.dot_dimension_numbers<[1], [0], [0], [1], [0, 0, 1, 1], [], []>} : vector<16x32xf32>, vector<32x32xf32>, vector<16x32xf32> -> vector<16x32xf32>
    %c0_43 = arith.constant 0 : index
    %c0_44 = arith.constant 0 : index
    %c0_45 = arith.constant 0 : index
    %97 = vector.load %arg7[%c0_43, %c0_44, %c0_45] : memref<1x1x32xf32, #tpu.memory_space<vmem>>, vector<1x1x32xf32>
    %98 = vector.shape_cast %97 : vector<1x1x32xf32> to vector<1x32xf32>
    %99 = vector.broadcast %98 : vector<1x32xf32> to vector<16x32xf32>
    %100 = arith.addf %96, %99 : vector<16x32xf32>
    %c0_46 = arith.constant 0 : index
    %c0_47 = arith.constant 0 : index
    %c0_48 = arith.constant 0 : index
    %101 = vector.load %arg8[%c0_46, %c0_47, %c0_48] : memref<1x4x32xf32, #tpu.memory_space<vmem>>, vector<1x4x32xf32>
    %102 = vector.shape_cast %101 : vector<1x4x32xf32> to vector<4x32xf32>
    %103 = arith.addf %3, %100 : vector<16x32xf32>
    %104 = vector.extract_strided_slice %102 {offsets = [0, 0], sizes = [1, 32], strides = [1, 1]} : vector<4x32xf32> to vector<1x32xf32>
    %105 = vector.extract_strided_slice %102 {offsets = [1, 0], sizes = [1, 32], strides = [1, 1]} : vector<4x32xf32> to vector<1x32xf32>
    %cst_49 = arith.constant dense<0.000000e+00> : vector<16xf32>
    %106 = vector.multi_reduction <add>, %103, %cst_49 [1] : vector<16x32xf32> to vector<16xf32>
    %107 = vector.shape_cast %106 : vector<16xf32> to vector<16x1xf32>
    %cst_50 = arith.constant 3.200000e+01 : f32
    %108 = vector.broadcast %cst_50 : f32 to vector<16x1xf32>
    %109 = arith.divf %107, %108 : vector<16x1xf32>
    %110 = vector.broadcast %109 : vector<16x1xf32> to vector<16x32xf32>
    %111 = arith.subf %103, %110 : vector<16x32xf32>
    %112 = arith.mulf %111, %111 : vector<16x32xf32>
    %cst_51 = arith.constant dense<0.000000e+00> : vector<16xf32>
    %113 = vector.multi_reduction <add>, %112, %cst_51 [1] : vector<16x32xf32> to vector<16xf32>
    %114 = vector.shape_cast %113 : vector<16xf32> to vector<16x1xf32>
    %cst_52 = arith.constant 3.200000e+01 : f32
    %115 = vector.broadcast %cst_52 : f32 to vector<16x1xf32>
    %116 = arith.divf %114, %115 : vector<16x1xf32>
    %cst_53 = arith.constant 9.99999974E-6 : f32
    %117 = vector.broadcast %cst_53 : f32 to vector<16x1xf32>
    %118 = arith.addf %116, %117 : vector<16x1xf32>
    %119 = math.rsqrt %118 : vector<16x1xf32>
    %120 = vector.broadcast %109 : vector<16x1xf32> to vector<16x32xf32>
    %121 = arith.subf %103, %120 : vector<16x32xf32>
    %122 = vector.broadcast %119 : vector<16x1xf32> to vector<16x32xf32>
    %123 = arith.mulf %121, %122 : vector<16x32xf32>
    %124 = vector.broadcast %104 : vector<1x32xf32> to vector<16x32xf32>
    %125 = arith.mulf %123, %124 : vector<16x32xf32>
    %126 = vector.broadcast %105 : vector<1x32xf32> to vector<16x32xf32>
    %127 = arith.addf %125, %126 : vector<16x32xf32>
    %c0_54 = arith.constant 0 : index
    %c0_55 = arith.constant 0 : index
    %c0_56 = arith.constant 0 : index
    %128 = vector.load %arg9[%c0_54, %c0_55, %c0_56] : memref<1x32x64xf32, #tpu.memory_space<vmem>>, vector<1x32x64xf32>
    %129 = vector.shape_cast %128 : vector<1x32x64xf32> to vector<32x64xf32>
    %cst_57 = arith.constant dense<0.000000e+00> : vector<16x64xf32>
    %130 = tpu.matmul %127, %129, %cst_57 {dimension_numbers = #tpu.dot_dimension_numbers<[1], [0], [0], [1], [0, 0, 1, 1], [], []>} : vector<16x32xf32>, vector<32x64xf32>, vector<16x64xf32> -> vector<16x64xf32>
    %c0_58 = arith.constant 0 : index
    %c0_59 = arith.constant 0 : index
    %c0_60 = arith.constant 0 : index
    %131 = vector.load %arg10[%c0_58, %c0_59, %c0_60] : memref<1x1x64xf32, #tpu.memory_space<vmem>>, vector<1x1x64xf32>
    %132 = vector.shape_cast %131 : vector<1x1x64xf32> to vector<1x64xf32>
    %133 = vector.broadcast %132 : vector<1x64xf32> to vector<16x64xf32>
    %134 = arith.addf %130, %133 : vector<16x64xf32>
    %135 = arith.mulf %134, %134 : vector<16x64xf32>
    %136 = arith.mulf %134, %135 : vector<16x64xf32>
    %cst_61 = arith.constant 4.471500e-02 : f32
    %137 = vector.broadcast %cst_61 : f32 to vector<16x64xf32>
    %138 = arith.mulf %137, %136 : vector<16x64xf32>
    %139 = arith.addf %134, %138 : vector<16x64xf32>
    %cst_62 = arith.constant 0.797884583 : f32
    %140 = vector.broadcast %cst_62 : f32 to vector<16x64xf32>
    %141 = arith.mulf %140, %139 : vector<16x64xf32>
    %142 = math.tanh %141 : vector<16x64xf32>
    %cst_63 = arith.constant 1.000000e+00 : f32
    %143 = vector.broadcast %cst_63 : f32 to vector<16x64xf32>
    %144 = arith.addf %143, %142 : vector<16x64xf32>
    %cst_64 = arith.constant 5.000000e-01 : f32
    %145 = vector.broadcast %cst_64 : f32 to vector<16x64xf32>
    %146 = arith.mulf %145, %144 : vector<16x64xf32>
    %147 = arith.mulf %134, %146 : vector<16x64xf32>
    %c0_65 = arith.constant 0 : index
    %c0_66 = arith.constant 0 : index
    %c0_67 = arith.constant 0 : index
    %148 = vector.load %arg11[%c0_65, %c0_66, %c0_67] : memref<1x64x32xf32, #tpu.memory_space<vmem>>, vector<1x64x32xf32>
    %149 = vector.shape_cast %148 : vector<1x64x32xf32> to vector<64x32xf32>
    %cst_68 = arith.constant dense<0.000000e+00> : vector<16x32xf32>
    %150 = tpu.matmul %147, %149, %cst_68 {dimension_numbers = #tpu.dot_dimension_numbers<[1], [0], [0], [1], [0, 0, 1, 1], [], []>} : vector<16x64xf32>, vector<64x32xf32>, vector<16x32xf32> -> vector<16x32xf32>
    %c0_69 = arith.constant 0 : index
    %c0_70 = arith.constant 0 : index
    %c0_71 = arith.constant 0 : index
    %151 = vector.load %arg12[%c0_69, %c0_70, %c0_71] : memref<1x1x32xf32, #tpu.memory_space<vmem>>, vector<1x1x32xf32>
    %152 = vector.shape_cast %151 : vector<1x1x32xf32> to vector<1x32xf32>
    %153 = vector.broadcast %152 : vector<1x32xf32> to vector<16x32xf32>
    %154 = arith.addf %150, %153 : vector<16x32xf32>
    %155 = arith.addf %127, %154 : vector<16x32xf32>
    %156 = vector.extract_strided_slice %102 {offsets = [2, 0], sizes = [1, 32], strides = [1, 1]} : vector<4x32xf32> to vector<1x32xf32>
    %157 = vector.extract_strided_slice %102 {offsets = [3, 0], sizes = [1, 32], strides = [1, 1]} : vector<4x32xf32> to vector<1x32xf32>
    %cst_72 = arith.constant dense<0.000000e+00> : vector<16xf32>
    %158 = vector.multi_reduction <add>, %155, %cst_72 [1] : vector<16x32xf32> to vector<16xf32>
    %159 = vector.shape_cast %158 : vector<16xf32> to vector<16x1xf32>
    %cst_73 = arith.constant 3.200000e+01 : f32
    %160 = vector.broadcast %cst_73 : f32 to vector<16x1xf32>
    %161 = arith.divf %159, %160 : vector<16x1xf32>
    %162 = vector.broadcast %161 : vector<16x1xf32> to vector<16x32xf32>
    %163 = arith.subf %155, %162 : vector<16x32xf32>
    %164 = arith.mulf %163, %163 : vector<16x32xf32>
    %cst_74 = arith.constant dense<0.000000e+00> : vector<16xf32>
    %165 = vector.multi_reduction <add>, %164, %cst_74 [1] : vector<16x32xf32> to vector<16xf32>
    %166 = vector.shape_cast %165 : vector<16xf32> to vector<16x1xf32>
    %cst_75 = arith.constant 3.200000e+01 : f32
    %167 = vector.broadcast %cst_75 : f32 to vector<16x1xf32>
    %168 = arith.divf %166, %167 : vector<16x1xf32>
    %cst_76 = arith.constant 9.99999974E-6 : f32
    %169 = vector.broadcast %cst_76 : f32 to vector<16x1xf32>
    %170 = arith.addf %168, %169 : vector<16x1xf32>
    %171 = math.rsqrt %170 : vector<16x1xf32>
    %172 = vector.broadcast %161 : vector<16x1xf32> to vector<16x32xf32>
    %173 = arith.subf %155, %172 : vector<16x32xf32>
    %174 = vector.broadcast %171 : vector<16x1xf32> to vector<16x32xf32>
    %175 = arith.mulf %173, %174 : vector<16x32xf32>
    %176 = vector.broadcast %156 : vector<1x32xf32> to vector<16x32xf32>
    %177 = arith.mulf %175, %176 : vector<16x32xf32>
    %178 = vector.broadcast %157 : vector<1x32xf32> to vector<16x32xf32>
    %179 = arith.addf %177, %178 : vector<16x32xf32>
    %c0_77 = arith.constant 0 : index
    %c0_78 = arith.constant 0 : index
    %180 = vector.load %arg16[%c0_77, %c0_78] : memref<16x32xf32, #tpu.memory_space<vmem>>, vector<16x32xf32>
    tpu.vector_store %arg16[%c0_77, %c0_78], %179 {strides = array<i32>} : memref<16x32xf32, #tpu.memory_space<vmem>>, vector<16x32xf32>,
    %c1_i32 = arith.constant 1 : i32
    %181 = arith.cmpi eq, %arg0, %c1_i32 : i32
    %182 = arith.extui %181 : i1 to i32
    %c0_i32_79 = arith.constant 0 : i32
    %183 = arith.cmpi ne, %182, %c0_i32_79 : i32
    scf.if %183 {
      %c0_80 = arith.constant 0 : index
      %c0_81 = arith.constant 0 : index
      %184 = vector.load %arg13[%c0_80, %c0_81] : memref<32x128xf32, #tpu.memory_space<vmem>>, vector<32x128xf32>
      %cst_82 = arith.constant dense<0.000000e+00> : vector<16x128xf32>
      %185 = tpu.matmul %179, %184, %cst_82 {dimension_numbers = #tpu.dot_dimension_numbers<[1], [0], [0], [1], [0, 0, 1, 1], [], []>} : vector<16x32xf32>, vector<32x128xf32>, vector<16x128xf32> -> vector<16x128xf32>
      %c0_83 = arith.constant 0 : index
      %c0_84 = arith.constant 0 : index
      %186 = vector.load %arg14[%c0_83, %c0_84] : memref<1x128xf32, #tpu.memory_space<vmem>>, vector<1x128xf32>
      %187 = vector.broadcast %186 : vector<1x128xf32> to vector<16x128xf32>
      %188 = arith.addf %185, %187 : vector<16x128xf32>
      %c0_85 = arith.constant 0 : index
      %c0_86 = arith.constant 0 : index
      %189 = vector.load %arg15[%c0_85, %c0_86] : memref<16x128xf32, #tpu.memory_space<vmem>>, vector<16x128xf32>
      tpu.vector_store %arg15[%c0_85, %c0_86], %188 {strides = array<i32>} : memref<16x128xf32, #tpu.memory_space<vmem>>, vector<16x128xf32>,
    } else {
    }
    return
  }
  func.func @transform_0(%arg0: i32) -> (i32, i32) {
    %c0_i32 = arith.constant 0 : i32
    %c0_i32_0 = arith.constant 0 : i32
    %c0_i32_1 = arith.constant 0 : i32
    return %c0_i32, %c0_i32_0 : i32, i32
  }
  func.func @transform_1(%arg0: i32) -> (i32, i32) {
    %c0_i32 = arith.constant 0 : i32
    %c0_i32_0 = arith.constant 0 : i32
    %c0_i32_1 = arith.constant 0 : i32
    return %c0_i32, %c0_i32_0 : i32, i32
  }
  func.func @transform_2(%arg0: i32) -> (i32, i32) {
    %c0_i32 = arith.constant 0 : i32
    %c0_i32_0 = arith.constant 0 : i32
    %c0_i32_1 = arith.constant 0 : i32
    return %c0_i32, %c0_i32_0 : i32, i32
  }
  func.func @transform_3(%arg0: i32) -> (i32, i32, i32) {
    %c0_i32 = arith.constant 0 : i32
    %c0_i32_0 = arith.constant 0 : i32
    %c0_i32_1 = arith.constant 0 : i32
    return %arg0, %c0_i32, %c0_i32_0 : i32, i32, i32
  }
  func.func @transform_4(%arg0: i32) -> (i32, i32, i32) {
    %c0_i32 = arith.constant 0 : i32
    %c0_i32_0 = arith.constant 0 : i32
    %c0_i32_1 = arith.constant 0 : i32
    return %arg0, %c0_i32, %c0_i32_0 : i32, i32, i32
  }
  func.func @transform_5(%arg0: i32) -> (i32, i32, i32) {
    %c0_i32 = arith.constant 0 : i32
    %c0_i32_0 = arith.constant 0 : i32
    %c0_i32_1 = arith.constant 0 : i32
    return %arg0, %c0_i32, %c0_i32_0 : i32, i32, i32
  }
  func.func @transform_6(%arg0: i32) -> (i32, i32, i32) {
    %c0_i32 = arith.constant 0 : i32
    %c0_i32_0 = arith.constant 0 : i32
    %c0_i32_1 = arith.constant 0 : i32
    return %arg0, %c0_i32, %c0_i32_0 : i32, i32, i32
  }
  func.func @transform_7(%arg0: i32) -> (i32, i32, i32) {
    %c0_i32 = arith.constant 0 : i32
    %c0_i32_0 = arith.constant 0 : i32
    %c0_i32_1 = arith.constant 0 : i32
    return %arg0, %c0_i32, %c0_i32_0 : i32, i32, i32
  }
  func.func @transform_8(%arg0: i32) -> (i32, i32, i32) {
    %c0_i32 = arith.constant 0 : i32
    %c0_i32_0 = arith.constant 0 : i32
    %c0_i32_1 = arith.constant 0 : i32
    return %arg0, %c0_i32, %c0_i32_0 : i32, i32, i32
  }
  func.func @transform_9(%arg0: i32) -> (i32, i32, i32) {
    %c0_i32 = arith.constant 0 : i32
    %c0_i32_0 = arith.constant 0 : i32
    %c0_i32_1 = arith.constant 0 : i32
    return %arg0, %c0_i32, %c0_i32_0 : i32, i32, i32
  }
  func.func @transform_10(%arg0: i32) -> (i32, i32, i32) {
    %c0_i32 = arith.constant 0 : i32
    %c0_i32_0 = arith.constant 0 : i32
    %c0_i32_1 = arith.constant 0 : i32
    return %arg0, %c0_i32, %c0_i32_0 : i32, i32, i32
  }
  func.func @transform_11(%arg0: i32) -> (i32, i32, i32) {
    %c0_i32 = arith.constant 0 : i32
    %c0_i32_0 = arith.constant 0 : i32
    %c0_i32_1 = arith.constant 0 : i32
    return %arg0, %c0_i32, %c0_i32_0 : i32, i32, i32
  }
  func.func @transform_12(%arg0: i32) -> (i32, i32) {
    %c0_i32 = arith.constant 0 : i32
    %c0_i32_0 = arith.constant 0 : i32
    %c0_i32_1 = arith.constant 0 : i32
    return %c0_i32, %c0_i32_0 : i32, i32
  }
  func.func @transform_13(%arg0: i32) -> (i32, i32) {
    %c0_i32 = arith.constant 0 : i32
    %c0_i32_0 = arith.constant 0 : i32
    %c0_i32_1 = arith.constant 0 : i32
    return %c0_i32, %c0_i32_0 : i32, i32
  }
  func.func @transform_14(%arg0: i32) -> (i32, i32) {
    %c0_i32 = arith.constant 0 : i32
    %c0_i32_0 = arith.constant 0 : i32
    %c0_i32_1 = arith.constant 0 : i32
    return %c0_i32, %c0_i32_0 : i32, i32
  }
}

</mosaic_0001>

<bundles_post_ra>
// kernel: multitask_xlmr_forward.1
= control target key start
LH: loop header
LB: loop body
LE: loop exit
PB: predicated region body
PF: predicated region fallthrough
CT: control target
= control target key end

     0   :  { %s2406_s29 = smov 0   ;;  %s2654_s0 = inlined_call_operand.vmem [shape: f32[16,32], index: 0, kind: input, shape index: {}]   ;;  %s2655_s1 = inlined_call_operand.vmem [shape: f32[2,8], index: 1, kind: input, shape index: {}]   ;;  %s2656_s2 = inlined_call_operand.vmem [shape: f32[2,32], index: 2, kind: input, shape index: {}]   ;;  %s2657_s3 = inlined_call_operand.vmem [shape: f32[2,32,96], index: 3, kind: input, shape index: {}]   ;;  %s2658_s4 = inlined_call_operand.vmem [shape: f32[2,1,96], index: 4, kind: input, shape index: {}]   ;;  %s2659_s5 = inlined_call_operand.vmem [shape: f32[2,32,32], index: 5, kind: input, shape index: {}]   ;;  %s2660_s6 = inlined_call_operand.vmem [shape: f32[2,1,32], index: 6, kind: input, shape index: {}]   ;;  %s2661_s7 = inlined_call_operand.vmem [shape: f32[2,4,32], index: 7, kind: input, shape index: {}]   ;;  %s2662_s8 = inlined_call_operand.vmem [shape: f32[2,32,64], index: 8, kind: input, shape index: {}]   ;;  %s2663_s9 = inlined_call_operand.vmem [shape: f32[2,1,64], index: 9, kind: input, shape index: {}]   ;;  %s2664_s10 = inlined_call_operand.vmem [shape: f32[2,64,32], index: 10, kind: input, shape index: {}]   ;;  %s2665_s11 = inlined_call_operand.vmem [shape: f32[2,1,32], index: 11, kind: input, shape index: {}]   ;;  %s2666_s12 = inlined_call_operand.vmem [shape: f32[32,128], index: 12, kind: input, shape index: {}]   ;;  %s2667_s13 = inlined_call_operand.vmem [shape: f32[1,128], index: 13, kind: input, shape index: {}]   ;;  %s2668_s14 = inlined_call_operand.vmem [shape: f32[16,128], index: 14, kind: output, shape index: {}]  }
   0x1   :  { %2672 = sst [smem:[#allocation5_spill]] %s2657_s3 }
   0x2   :  { %2673 = sst [smem:[#allocation6_spill]] %s2659_s5 }
   0x3   :  { %2674 = sst [smem:[#allocation7_spill]] %s2666_s12 }
   0x4   :  { %2675 = sst [smem:[#allocation8_spill]] %s2667_s13 }
   0x5   :  { %2676 = sst [smem:[#allocation9_spill]] %s2668_s14 }
   0x6 LB: > { %2677 = sst [smem:[#allocation4_spill]] %s2321_s29  ;;  %s2412_s30 = sadd.s32 4294967295, %s2321_s29   ;;  %s2321_s29 = sphi %s2406_s29, %s24_s29  }
   0x7   : > { %p2019_p0 = scmp.ge.s32.totalorder %s2321_s29, 1  ;;  %p478_p1 = scmp.lt.s32.totalorder %s2321_s29, 3 }
   0x9   : > { %p479_p2 = pnand %p2019_p0, %p478_p1 }
   0xa   : > { %p550_p3 = scmp.lt.s32.totalorder (!%p479_p2), %s2412_s30, 1  ;;  %s2678_s3 = sld [smem:[#allocation5_spill]] (!%p479_p2) }
   0xb   : > { %482 = sbr.rel (%p479_p2) target bundleno = 3083 (0xc0b), region = 76  ;;  %s2679_s5 = sld [smem:[#allocation6_spill]] (!%p479_p2) }
   0xc   : > { %p2029_p4 = scmp.ne.s32.totalorder (!%p479_p2), %s2412_s30, 0 }
  0x12   : > { %s2418_s15 = scalar_select %p550_p3, %s2412_s30, 1 }
  0x13   : > { %589 = sbr.rel (%p2029_p4) target bundleno = 338 (0x152), region = 80  ;;  %v590_v0 = vld [vmem:[%s2654_s0] sm:$0xff] (!%p2029_p4)  ;;  %vm593_vm0 = vcmask (!%p2029_p4), 261120   ;;  %v591_v1 = vld [vmem:[%s2654_s0 + $0x8] sm:$0xff] (!%p2029_p4)  ;;  %v621_v16 = vlaneseq (!%p2029_p4) }
  0x14   : > { %s2062_s16 = sshll.u32 %s2418_s15, 5  ;;  %s2024_s29 = sshll.u32 %s2418_s15, 2  ;;  %v594_v2 = vsel (!%p2029_p4), %vm593_vm0, %v590_v0, 0.0  ;;  %v597_v3 = vsel (!%p2029_p4), %vm593_vm0, %v591_v1, 0.0  ;;  %v592_v23 = vld [vmem:[%s2656_s2] sm:$0x3] (!%p2029_p4) }
  0x15   : > { %s2428_s22 = scalar_lea.vmem %s2678_s3, %s2062_s16  ;;  %s2433_s25 = scalar_lea.vmem %s2679_s5, %s2062_s16  ;;  %595 = vadd.xlane.f32.xlu0 (!%p2029_p4), %v594_v2  ;;  %v622_v20 = vshrl.u32 (!%p2029_p4), %v621_v16, 7 }
  0x16   : > { %s2443_s17 = scalar_lea.vmem %s2661_s7, %s2024_s29  ;;  %s2448_s20 = scalar_lea.vmem %s2662_s8, %s2062_s16 }
  0x17   : > { %s577_s23 = scalar_lea.vmem %s2663_s9, %s2418_s15  ;;  %s2065_s24 = sshll.u32 %s2418_s15, 6  ;;  %v623_v22 = vsub.s32 (!%p2029_p4), 0, %v622_v20  ;;  %v629_v24 = vsub.s32 (!%p2029_p4), 1, %v622_v20 }
  0x18   : > { %s2458_s26 = scalar_lea.vmem %s2664_s10, %s2065_s24  ;;  %s585_s13 = scalar_lea.vmem %s2665_s11, %s2418_s15 }
  0x19   : > { %598 = vadd.xlane.f32.xlu0 (!%p2029_p4), %v597_v3  ;;  %v624_v25 = vrot.slane (!%p2029_p4), %v592_v23, %v623_v22  ;;  %v630_v27 = vrot.slane (!%p2029_p4), %v592_v23, %v629_v24 }
  0xa2   : > { %v596_v4 = vpop.xlane.xlu0 %595 }
  0xa3   : > { %v601_v5 = vmul.f32 0.03125, %v596_v4 }
  0xa5   : > { %v603_v6 = vsub.f32 %v590_v0, %v601_v5 }
  0xa6   : > { %v599_v7 = vpop.xlane.xlu0 %598 }
  0xa7   : > { %v602_v8 = vmul.f32 0.03125, %v599_v7  ;;  %v605_v9 = vmul.f32 %v603_v6, %v603_v6 }
  0xa9   : > { %v604_v10 = vsub.f32 %v591_v1, %v602_v8  ;;  %v607_v11 = vsel %vm593_vm0, %v605_v9, 0.0 }
  0xaa   : > { %608 = vadd.xlane.f32.xlu1 %v607_v11 }
  0xab   : > { %v606_v12 = vmul.f32 %v604_v10, %v604_v10 }
  0xad   : > { %v610_v13 = vsel %vm593_vm0, %v606_v12, 0.0 }
  0xae   : > { %611 = vadd.xlane.f32.xlu1 %v610_v13 }
 0x137   : > { %v609_v14 = vpop.xlane.xlu1 %608 }
 0x138   : > { %v613_v15 = vmul.f32 0.03125, %v609_v14 }
 0x13a   : > { %v615_v17 = vadd.f32 1e-05, %v613_v15 }
 0x13b   : > { %v612_v18 = vpop.xlane.xlu1 %611 }
 0x13c   : > { %2283 = vrsqrt.f32 %v615_v17  ;;  %v614_v19 = vmul.f32 0.03125, %v612_v18 }
 0x13e   : > { %v616_v21 = vadd.f32 1e-05, %v614_v19 }
 0x140   : > { %2285 = vrsqrt.f32 %v616_v21 }
 0x146   : > { %v2284_v26 = vpop.eup %2283 }
 0x147   : > { %v619_v28 = vmul.f32 %v2284_v26, %v603_v6 }
 0x149   : > { %v625_v29 = vmul.f32 %v624_v25, %v619_v28 }
 0x14a   : > { %v2286_v30 = vpop.eup %2285 }
 0x14b   : > { %v631_v31 = vadd.f32 %v630_v27, %v625_v29  ;;  %v620_v32 = vmul.f32 %v2286_v30, %v604_v10 }
 0x14d   : > { %633 = vst.msk [vmem:[#allocation2] sm:$0xff] %vm593_vm0, %v631_v31  ;;  %v626_v33 = vmul.f32 %v624_v25, %v620_v32 }
 0x14f   : > { %v632_v34 = vadd.f32 %v630_v27, %v626_v33 }
 0x151   : > { %634 = vst.msk [vmem:[#allocation2 + $0x8] sm:$0xff] %vm593_vm0, %v632_v34 }
 0x152 PF: > { %v637_v35 = vld [vmem:[%s2428_s22] sm:$0xff]  ;;  %v638_v36 = vld [vmem:[%s2428_s22 + $0x8] sm:$0xff]  ;;  %v639_v37 = vld [vmem:[%s2428_s22 + $0x10] sm:$0xff]  ;;  %vm648_vm1 = vcmask 261120   ;;  %v2323_v43 = vmov 0.0   ;;  %vm2324_vm2 = vmmov 0   ;;  %s2680_s28 = scalar_lea.vmem %s2658_s4, %s2418_s15 }
 0x153   : > { %v2219_v38 = vpack.c.bf16 %v638_v36, %v637_v35  ;;  %v640_v39 = vld [vmem:[%s2428_s22 + $0x18] sm:$0xff]  ;;  %2137 = vmatprep.subr.mxu0 %v2323_v43  ;;  %2139 = vmatprep.mubr.msk.f32.mxu0 %vm2324_vm2, %v2323_v43  ;;  %v2030_v44 = vld [vmem:[%s2680_s28] ss:$0 sm:$0xff]  ;;  %s2325_s18 = smov 112   ;;  %s2326_s21 = smov 96   ;;  %vm734_vm3 = vcmask 130048  }
 0x154   : > { %v2484_v40 = vld [vmem:[#allocation2] sm:$0xff]  ;;  %v2223_v41 = vpack.c.bf16 %v640_v39, %v639_v37  ;;  %s2327_s24 = smov 80   ;;  %vm815_vm4 = vcmask 64512   ;;  %s2328_s16 = smov 64   ;;  %vm1075_vm5 = vcmask 261248   ;;  %vm1682_vm6 = vcmask 523264  }
 0x155   : > { %2124 = vmatprep.mubr.msk.f32.mxu1 %vm648_vm1, %v2484_v40  ;;  %2220 = vmatprep.subr.bf16.mxu1 %v2219_v38  ;;  %v2035_v56 = vld [vmem:[%s2655_s1] ss:$0 sm:$0xff]  ;;  %v2042_v2 = vld [vmem:[%s2655_s1 + $0x1] ss:$0 sm:$0xff]  ;;  %s2329_s5 = smov 48   ;;  %s2330_s12 = smov 16  }
 0x156   : > { %2222 = vmatpush3.bf16.msra.mxu1 %v2219_v38  ;;  %s2681_s22 = scalar_lea.vmem %s2660_s6, %s2418_s15  ;;  %p2056_p5 = scmp.ne.s32.totalorder %s2412_s30, 1 }
 0x157   : > { %2224 = vmatprep.subr.bf16.mxu1 %v2223_v41  ;;  %s2682_s28 = sld [smem:[#allocation7_spill]] (!%p2056_p5) }
 0x158   : > { %v2488_v42 = vld [vmem:[#allocation2 + $0x8] sm:$0xff] }
 0x15a   : > { %2226 = vmatpush3.bf16.msra.mxu1 %v2223_v41 }
 0x15b   : > { %2127 = vmatprep.subr.mxu1 %v2323_v43 }
 0x15d   : > { %2125 = vmatmul.mubr.msk.f32.vlgmr.msra.gmra.mrb[0].mxu1 %vm648_vm1, %v2488_v42 }
 0x15e   : > { %2129 = vmatprep.mubr.msk.f32.mxu1 %vm2324_vm2, %v2323_v43 }
 0x230   : > { %v2126_v45 = vpop.f32.mrb[0].mxu1 }
 0x231   : > { %v721_v46 = vpop.f32.mrb[1].mxu1  ;;  %v2507_v48 = vadd.f32 %v2126_v45, %v2030_v44 }
 0x232   : > { %v2503_v47 = vadd.f32 %v2030_v44, %v721_v46 }
 0x234   : > { %904 = vrot.lane.b32.xlu1 %v2503_v47, %s2325_s18  ;;  %732 = vrot.lane.b32.xlu0 %v2503_v47, %s2326_s21 }
 0x238   : > { %1079 = vrot.lane.b32.xlu1 %v2507_v48, %s2326_s21  ;;  %906 = vrot.lane.b32.xlu0 %v2503_v47, %s2327_s24 }
 0x23c   : > { %1249 = vrot.lane.b32.xlu1 %v2507_v48, %s2325_s18  ;;  %1251 = vrot.lane.b32.xlu0 %v2507_v48, %s2327_s24 }
 0x2a6   : > { %v733_v49 = vpop.permute.xlu0 %732  ;;  %v905_v50 = vpop.permute.xlu1 %904 }
 0x2a7   : > { %2128 = vmatpush3.xpose.msk.msra.mxu1 %vm734_vm3, %v733_v49 }
 0x2a8   : > { %2132 = vmatprep.subr.mxu1 %v2323_v43 }
 0x2aa   : > { %2130 = vmatmul.mubr.msk.f32.vlgmr.msra.gmra.mrb[2].mxu1 %vm734_vm3, %v2503_v47  ;;  %v907_v51 = vpop.permute.xlu0 %906  ;;  %v1080_v52 = vpop.permute.xlu1 %1079 }
 0x2ab   : > { %2138 = vmatpush3.xpose.msk.msra.mxu0 %vm734_vm3, %v907_v51  ;;  %2134 = vmatprep.mubr.msk.f32.mxu1 %vm2324_vm2, %v2323_v43 }
 0x2ac   : > { %2147 = vmatprep.subr.mxu0 %v2323_v43 }
 0x2ae   : > { %2140 = vmatmul.mubr.msk.f32.vlgmr.msra.gmra.mrb[0].mxu0 %vm734_vm3, %v905_v50  ;;  %v1252_v53 = vpop.permute.xlu0 %1251  ;;  %v1250_v54 = vpop.permute.xlu1 %1249 }
 0x2af   : > { %2148 = vmatpush3.xpose.msk.msra.mxu0 %vm734_vm3, %v1080_v52  ;;  %2149 = vmatprep.mubr.msk.f32.mxu0 %vm2324_vm2, %v2323_v43  ;;  %v1423_v52 = vld [vmem:[%s2433_s25] sm:$0xff] }
 0x2b0   : > { %2157 = vmatprep.subr.mxu0 %v2323_v43 }
 0x2b2   : > { %2150 = vmatmul.mubr.msk.f32.vlgmr.msra.gmra.mrb[2].mxu0 %vm734_vm3, %v2507_v48 }
 0x2b3   : > { %2158 = vmatpush3.xpose.msk.msra.mxu0 %vm734_vm3, %v1252_v53  ;;  %2159 = vmatprep.mubr.msk.f32.mxu0 %vm2324_vm2, %v2323_v43  ;;  %v1424_v53 = vld [vmem:[%s2433_s25 + $0x8] sm:$0xff] }
 0x2b6   : > { %2160 = vmatmul.mubr.msk.f32.vlgmr.msra.gmra.mrb[4].mxu0 %vm734_vm3, %v1250_v54  ;;  %v2227_v54 = vpack.c.bf16 %v1424_v53, %v1423_v52  ;;  %v1667_v52 = vld [vmem:[%s2458_s26] sm:$0xff]  ;;  %v1668_v53 = vld [vmem:[%s2458_s26 + $0x8] sm:$0xff] }
 0x2b8   : > { %2228 = vmatprep.subr.bf16.mxu0 %v2227_v54 }
 0x2b9   : > { %2230 = vmatpush3.bf16.msra.mxu0 %v2227_v54  ;;  %v2243_v54 = vpack.c.bf16 %v1668_v53, %v1667_v52 }
 0x37d   : > { %v805_v55 = vpop.f32.mrb[2].mxu1 }
 0x37e   : > { %v809_v57 = vmul.f32 0.25, %v805_v55  ;;  %v2131_v58 = vpop.f32.mrb[3].mxu1 }
 0x380   : > { %v814_v59 = vadd.f32 %v2035_v56, %v809_v57  ;;  %v1426_v57 = vld [vmem:[%s2433_s25 + $0x18] sm:$0xff] }
 0x381   : > { %v978_v60 = vpop.f32.mrb[0].mxu0 }
 0x382   : > { %v982_v61 = vmul.f32 0.25, %v978_v60  ;;  %v2141_v62 = vpop.f32.mrb[1].mxu0  ;;  %v816_v63 = vsel %vm815_vm4, %v814_v59, -inf }
 0x383   : > { %817 = vmax.xlane.f32.xlu0 %v816_v63 }
 0x384   : > { %v983_v0 = vadd.f32 %v2035_v56, %v982_v61  ;;  %v1425_v56 = vld [vmem:[%s2433_s25 + $0x10] sm:$0xff]  ;;  %s2684_s25 = sld [smem:[#allocation9_spill]] (!%p2056_p5) }
 0x385   : > { %v1151_v1 = vpop.f32.mrb[2].mxu0 }
 0x386   : > { %v1155_v3 = vmul.f32 0.25, %v1151_v1  ;;  %v2151_v4 = vpop.f32.mrb[3].mxu0  ;;  %v984_v5 = vsel %vm815_vm4, %v983_v0, -inf }
 0x387   : > { %985 = vmax.xlane.f32.xlu1 %v984_v5  ;;  %v2047_v5 = vld [vmem:[%s2681_s22] ss:$0 sm:$0xff] }
 0x388   : > { %v1160_v6 = vadd.f32 %v2042_v2, %v1155_v3 }
 0x389   : > { %v1323_v7 = vpop.f32.mrb[4].mxu0 }
 0x38a   : > { %v1327_v8 = vmul.f32 0.25, %v1323_v7  ;;  %v2161_v9 = vpop.f32.mrb[5].mxu0  ;;  %v1161_v10 = vsel %vm815_vm4, %v1160_v6, -inf }
 0x38b   : > { %1162 = vmax.xlane.f32.xlu0 %v1161_v10 }
 0x38c   : > { %v1328_v11 = vadd.f32 %v2042_v2, %v1327_v8 }
 0x38e   : > { %v1329_v12 = vsel %vm815_vm4, %v1328_v11, -inf }
 0x38f   : > { %1330 = vmax.xlane.f32.xlu0 %v1329_v12 }
 0x398   : > { %827 = vrot.lane.b32.xlu1 %v2503_v47, %s2328_s16 }
 0x410   : > { %v818_v13 = vpop.xlane.xlu0 %817 }
 0x411   : > { %v819_v14 = vsub.f32 %v814_v59, %v818_v13  ;;  %v2231_v59 = vpack.c.bf16 %v1426_v57, %v1425_v56  ;;  %v1670_v56 = vld [vmem:[%s2458_s26 + $0x18] sm:$0xff] }
 0x413   : > { %v820_v15 = vmul.f32 1.442695, %v819_v14  ;;  %2232 = vmatprep.subr.bf16.mxu0 %v2231_v59 }
 0x414   : > { %v986_v16 = vpop.xlane.xlu1 %985  ;;  %2234 = vmatpush3.bf16.msra.mxu0 %v2231_v59  ;;  %v1672_v59 = vld [vmem:[%s2458_s26 + $0x28] sm:$0xff] }
 0x415   : > { %2287 = vpow2.f32 %v820_v15  ;;  %v987_v17 = vsub.f32 %v983_v0, %v986_v16  ;;  %2244 = vmatprep.subr.bf16.mxu0 %v2243_v54 }
 0x417   : > { %v988_v18 = vmul.f32 1.442695, %v987_v17 }
 0x418   : > { %v828_v19 = vpop.permute.xlu1 %827  ;;  %v1163_v20 = vpop.xlane.xlu0 %1162 }
 0x419   : > { %2289 = vpow2.f32 %v988_v18  ;;  %v1164_v21 = vsub.f32 %v1160_v6, %v1163_v20  ;;  %2133 = vmatpush3.msra.mxu1 %v828_v19 }
 0x41a   : > { %2142 = vmatprep.subr.mxu1 %v2323_v43 }
 0x41b   : > { %v1165_v22 = vmul.f32 1.442695, %v1164_v21 }
 0x41c   : > { %v1331_v23 = vpop.xlane.xlu0 %1330 }
 0x41d   : > { %2291 = vpow2.f32 %v1165_v22  ;;  %v1332_v24 = vsub.f32 %v1328_v11, %v1331_v23  ;;  %v1557_v22 = vld [vmem:[%s2448_s20] sm:$0xff]  ;;  %v1558_v23 = vld [vmem:[%s2448_s20 + $0x8] sm:$0xff] }
 0x41f   : > { %v2288_v25 = vpop.eup %2287  ;;  %v1333_v26 = vmul.f32 1.442695, %v1332_v24  ;;  %v2235_v24 = vpack.c.bf16 %v1558_v23, %v1557_v22 }
 0x420   : > { %v822_v27 = vsel %vm815_vm4, %v2288_v25, 0.0 }
 0x421   : > { %2293 = vpow2.f32 %v1333_v26  ;;  %823 = vadd.xlane.f32.xlu1 %v822_v27  ;;  %v1560_v26 = vld [vmem:[%s2448_s20 + $0x18] sm:$0xff] }
 0x423   : > { %v2290_v28 = vpop.eup %2289 }
 0x424   : > { %v990_v29 = vsel %vm815_vm4, %v2290_v28, 0.0 }
 0x425   : > { %991 = vadd.xlane.f32.xlu0 %v990_v29 }
 0x427   : > { %v2292_v30 = vpop.eup %2291 }
 0x428   : > { %v1167_v31 = vsel %vm815_vm4, %v2292_v30, 0.0 }
 0x429   : > { %1168 = vadd.xlane.f32.xlu1 %v1167_v31 }
 0x42b   : > { %v2294_v32 = vpop.eup %2293 }
 0x42c   : > { %v1335_v33 = vsel %vm815_vm4, %v2294_v32, 0.0 }
 0x42d   : > { %1336 = vadd.xlane.f32.xlu0 %v1335_v33 }
 0x43a   : > { %1172 = vrot.lane.b32.xlu1 %v2507_v48, %s2328_s16  ;;  %s2683_s16 = sld [smem:[#allocation8_spill]] (!%p2056_p5) }
 0x43e   : > { %1340 = vrot.lane.b32.xlu1 %v2507_v48, %s2329_s5 }
 0x443   : > { %995 = vrot.lane.b32.xlu0 %v2503_v47, %s2329_s5 }
 0x4ae   : > { %v824_v34 = vpop.xlane.xlu1 %823 }
 0x4af   : > { %2295 = vrcp.f32 %v824_v34 }
 0x4b2   : > { %v992_v35 = vpop.xlane.xlu0 %991 }
 0x4b3   : > { %2297 = vrcp.f32 %v992_v35 }
 0x4b6   : > { %v1169_v36 = vpop.xlane.xlu1 %1168 }
 0x4b7   : > { %2299 = vrcp.f32 %v1169_v36 }
 0x4b9   : > { %v2296_v37 = vpop.eup %2295 }
 0x4ba   : > { %v826_v38 = vmul.f32 %v2296_v37, %v2288_v25  ;;  %v1337_v39 = vpop.xlane.xlu0 %1336  ;;  %v1173_v45 = vpop.permute.xlu1 %1172  ;;  %v1559_v25 = vld [vmem:[%s2448_s20 + $0x10] sm:$0xff]  ;;  %v2592_v37 = vld [vmem:[%s2443_s17] sm:$0xf] }
 0x4bb   : > { %2301 = vrcp.f32 %v1337_v39  ;;  %v2239_v27 = vpack.c.bf16 %v1560_v26, %v1559_v25 }
 0x4bc   : > { %2135 = vmatmul.mubr.msk.f32.vlgmr.msra.gmra.mrb[4].mxu1 %vm815_vm4, %v826_v38 }
 0x4bd   : > { %v2298_v41 = vpop.eup %2297  ;;  %2144 = vmatprep.mubr.msk.f32.mxu1 %vm2324_vm2, %v2323_v43 }
 0x4be   : > { %v994_v44 = vmul.f32 %v2298_v41, %v2290_v28  ;;  %v996_v46 = vpop.permute.xlu0 %995  ;;  %v1341_v49 = vpop.permute.xlu1 %1340 }
 0x4bf   : > { %2143 = vmatpush3.msra.mxu1 %v996_v46 }
 0x4c0   : > { %2145 = vmatmul.mubr.msk.f32.vlgmr.msra.gmra.mrb[6].mxu1 %vm815_vm4, %v994_v44  ;;  %2152 = vmatprep.subr.mxu1 %v2323_v43 }
 0x4c1   : > { %v2300_v47 = vpop.eup %2299  ;;  %2153 = vmatpush3.msra.mxu1 %v1173_v45  ;;  %2154 = vmatprep.mubr.msk.f32.mxu1 %vm2324_vm2, %v2323_v43 }
 0x4c2   : > { %v1171_v48 = vmul.f32 %v2300_v47, %v2292_v30  ;;  %2162 = vmatprep.subr.mxu1 %v2323_v43  ;;  %v1545_v30 = vlaneseq }
 0x4c4   : > { %2155 = vmatmul.mubr.msk.f32.vlgmr.msra.gmra.mrb[8].mxu1 %vm815_vm4, %v1171_v48  ;;  %v2588_v34 = vshrl.u32 %v1545_v30, 7 }
 0x4c5   : > { %v2302_v50 = vpop.eup %2301  ;;  %2163 = vmatpush3.msra.mxu1 %v1341_v49  ;;  %2164 = vmatprep.mubr.msk.f32.mxu1 %vm2324_vm2, %v2323_v43 }
 0x4c6   : > { %v1339_v51 = vmul.f32 %v2302_v50, %v2294_v32  ;;  %2236 = vmatprep.subr.bf16.mxu1 %v2235_v24  ;;  %v1547_v36 = vsub.s32 0, %v2588_v34  ;;  %v1553_v38 = vsub.s32 1, %v2588_v34 }
 0x4c8   : > { %2165 = vmatmul.mubr.msk.f32.vlgmr.msra.gmra.mrb[10].mxu1 %vm815_vm4, %v1339_v51  ;;  %v1548_v39 = vrot.slane %v2592_v37, %v1547_v36  ;;  %v1554_v45 = vrot.slane %v2592_v37, %v1553_v38 }
 0x4c9   : > { %2238 = vmatpush3.bf16.msra.mxu1 %v2235_v24 }
 0x4ca   : > { %2240 = vmatprep.subr.bf16.mxu1 %v2239_v27 }
 0x4cd   : > { %2242 = vmatpush3.bf16.msra.mxu1 %v2239_v27 }
 0x58f   : > { %v899_v55 = vpop.f32.mrb[4].mxu1 }
 0x590   : > { %903 = vst.msk [vmem:[#allocation3] sm:$0xff] %vm734_vm3, %v899_v55  ;;  %v2136_v58 = vpop.f32.mrb[5].mxu1  ;;  %v1669_v55 = vld [vmem:[%s2458_s26 + $0x10] sm:$0xff] }
 0x591   : > { %v2247_v57 = vpack.c.bf16 %v1670_v56, %v1669_v55  ;;  %v1671_v58 = vld [vmem:[%s2458_s26 + $0x20] sm:$0xff] }
 0x593   : > { %v1067_v60 = vpop.f32.mrb[6].mxu1 }
 0x594   : > { %1072 = vrot.lane.b32.xlu0 %v1067_v60, %s2330_s12  ;;  %v2146_v43 = vpop.f32.mrb[7].mxu1  ;;  %v2251_v60 = vpack.c.bf16 %v1672_v59, %v1671_v58 }
 0x595   : > { %v1673_v43 = vld [vmem:[%s2458_s26 + $0x30] sm:$0xff] }
 0x597   : > { %v1244_v61 = vpop.f32.mrb[8].mxu1 }
 0x598   : > { %1248 = vst.msk [vmem:[#allocation3 + $0x8] sm:$0xff] %vm734_vm3, %v1244_v61  ;;  %v2156_v62 = vpop.f32.mrb[9].mxu1  ;;  %v1674_v61 = vld [vmem:[%s2458_s26 + $0x38] sm:$0xff] }
 0x599   : > { %v2255_v62 = vpack.c.bf16 %v1674_v61, %v1673_v43  ;;  %v1812_v61 = vld [vmem:[%s2682_s28 + $0x10] sm:$0xff] (!%p2056_p5) }
 0x59b   : > { %v1412_v63 = vpop.f32.mrb[10].mxu1 }
 0x59c   : > { %1417 = vrot.lane.b32.xlu1 %v1412_v63, %s2330_s12  ;;  %v2166_v0 = vpop.f32.mrb[11].mxu1  ;;  %v2050_v63 = vld [vmem:[%s577_s23] ss:$0 sm:$0xff] }
 0x606   : > { %v1073_v1 = vpop.permute.xlu0 %1072 }
 0x607   : > { %1076 = vst.msk [vmem:[#allocation3] sm:$0xff] %vm1075_vm5, %v1073_v1 }
 0x60e   : > { %v1418_v2 = vpop.permute.xlu1 %1417  ;;  %v1421_v3 = vld [vmem:[#allocation3] sm:$0xff] }
 0x60f   : > { %1420 = vst.msk [vmem:[#allocation3 + $0x8] sm:$0xff] %vm1075_vm5, %v1418_v2  ;;  %2175 = vmatprep.mubr.msk.f32.mxu0 %vm648_vm1, %v1421_v3 }
 0x616   : > { %v1422_v4 = vld [vmem:[#allocation3 + $0x8] sm:$0xff] }
 0x617   : > { %2176 = vmatmul.mubr.msk.f32.vlgmr.msra.gmra.mrb[6].mxu0 %vm648_vm1, %v1422_v4 }
 0x618   : > { %2246 = vmatpush3.bf16.msra.mxu0 %v2243_v54 }
 0x619   : > { %2248 = vmatprep.subr.bf16.mxu0 %v2247_v57 }
 0x61c   : > { %2250 = vmatpush3.bf16.msra.mxu0 %v2247_v57 }
 0x61d   : > { %2252 = vmatprep.subr.bf16.mxu0 %v2251_v60 }
 0x620   : > { %2254 = vmatpush3.bf16.msra.mxu0 %v2251_v60 }
 0x621   : > { %2256 = vmatprep.subr.bf16.mxu0 %v2255_v62 }
 0x624   : > { %2258 = vmatpush3.bf16.msra.mxu0 %v2255_v62 }
 0x6ea   : > { %v2177_v6 = vpop.f32.mrb[6].mxu0 }
 0x6eb   : > { %v1512_v7 = vadd.f32 %v2177_v6, %v2047_v5  ;;  %v1506_v8 = vpop.f32.mrb[7].mxu0 }
 0x6ec   : > { %v1507_v9 = vadd.f32 %v2047_v5, %v1506_v8 }
 0x6ed   : > { %v1517_v10 = vadd.f32 %v1512_v7, %v2488_v42 }
 0x6ee   : > { %v1516_v11 = vadd.f32 %v1507_v9, %v2484_v40 }
 0x6ef   : > { %v1521_v12 = vsel %vm648_vm1, %v1517_v10, 0.0 }
 0x6f0   : > { %1522 = vadd.xlane.f32.xlu1 %v1521_v12  ;;  %v1518_v13 = vsel %vm648_vm1, %v1516_v11, 0.0 }
 0x6f1   : > { %1519 = vadd.xlane.f32.xlu0 %v1518_v13 }
 0x77d   : > { %v1523_v14 = vpop.xlane.xlu1 %1522 }
 0x77e   : > { %v1526_v15 = vmul.f32 0.03125, %v1523_v14  ;;  %v1520_v16 = vpop.xlane.xlu0 %1519 }
 0x77f   : > { %v1525_v17 = vmul.f32 0.03125, %v1520_v16 }
 0x780   : > { %v1528_v18 = vsub.f32 %v1517_v10, %v1526_v15 }
 0x781   : > { %v1527_v19 = vsub.f32 %v1516_v11, %v1525_v17 }
 0x782   : > { %v1530_v40 = vmul.f32 %v1528_v18, %v1528_v18 }
 0x783   : > { %v1529_v20 = vmul.f32 %v1527_v19, %v1527_v19 }
 0x784   : > { %v1534_v21 = vsel %vm648_vm1, %v1530_v40, 0.0  ;;  %v2053_v40 = vld [vmem:[%s585_s13] ss:$0 sm:$0xff] }
 0x785   : > { %v1531_v42 = vsel %vm648_vm1, %v1529_v20, 0.0 }
 0x786   : > { %1532 = vadd.xlane.f32.xlu0 %v1531_v42 }
 0x78a   : > { %1535 = vadd.xlane.f32.xlu0 %v1534_v21 }
 0x813   : > { %v1533_v28 = vpop.xlane.xlu0 %1532 }
 0x814   : > { %v1537_v29 = vmul.f32 0.03125, %v1533_v28 }
 0x816   : > { %v1539_v31 = vadd.f32 1e-05, %v1537_v29 }
 0x817   : > { %v1536_v32 = vpop.xlane.xlu0 %1535 }
 0x818   : > { %2303 = vrsqrt.f32 %v1539_v31  ;;  %v1538_v33 = vmul.f32 0.03125, %v1536_v32 }
 0x81a   : > { %v1540_v35 = vadd.f32 1e-05, %v1538_v33 }
 0x81c   : > { %2305 = vrsqrt.f32 %v1540_v35 }
 0x822   : > { %v2304_v41 = vpop.eup %2303 }
 0x823   : > { %v1543_v44 = vmul.f32 %v2304_v41, %v1527_v19 }
 0x825   : > { %v1549_v46 = vmul.f32 %v1548_v39, %v1543_v44 }
 0x826   : > { %v2306_v47 = vpop.eup %2305 }
 0x827   : > { %v1544_v48 = vmul.f32 %v2306_v47, %v1528_v18  ;;  %v1555_v49 = vadd.f32 %v1554_v45, %v1549_v46 }
 0x829   : > { %v1550_v50 = vmul.f32 %v1548_v39, %v1544_v48  ;;  %2186 = vmatprep.mubr.msk.f32.mxu1 %vm648_vm1, %v1555_v49 }
 0x82b   : > { %v1556_v51 = vadd.f32 %v1554_v45, %v1550_v50  ;;  %v1794_v50 = vsub.s32 2, %v2588_v34 }
 0x82d   : > { %2187 = vmatmul.mubr.msk.f32.vlgmr.msra.gmra.mrb[12].mxu1 %vm648_vm1, %v1556_v51  ;;  %v1795_v52 = vrot.slane %v2592_v37, %v1794_v50 }
 0x900   : > { %v2188_v0 = vpop.f32.mrb[12].mxu1 }
 0x901   : > { %v1646_v1 = vadd.f32 %v2188_v0, %v2050_v63  ;;  %v1640_v2 = vpop.f32.mrb[13].mxu1 }
 0x902   : > { %v1641_v3 = vadd.f32 %v2050_v63, %v1640_v2  ;;  %v1813_v63 = vld [vmem:[%s2682_s28 + $0x18] sm:$0xff] (!%p2056_p5) }
 0x903   : > { %v1650_v4 = vmul.f32 %v1646_v1, %v1646_v1  ;;  %v2263_v0 = vpack.c.bf16 (!%p2056_p5), %v1813_v63, %v1812_v61 }
 0x904   : > { %v1649_v5 = vmul.f32 %v1641_v3, %v1641_v3 }
 0x905   : > { %v1652_v6 = vmul.f32 %v1650_v4, %v1646_v1 }
 0x906   : > { %v1651_v7 = vmul.f32 %v1649_v5, %v1641_v3 }
 0x907   : > { %v1654_v8 = vmul.f32 0.044715, %v1652_v6 }
 0x908   : > { %v1653_v9 = vmul.f32 0.044715, %v1651_v7 }
 0x909   : > { %v1656_v10 = vadd.f32 %v1654_v8, %v1646_v1 }
 0x90a   : > { %v1655_v11 = vadd.f32 %v1653_v9, %v1641_v3 }
 0x90b   : > { %v1658_v12 = vmul.f32 0.7978846, %v1656_v10 }
 0x90c   : > { %v1657_v13 = vmul.f32 0.7978846, %v1655_v11 }
 0x90d   : > { %2307 = vtanh.f32 %v1658_v12 }
 0x90e   : > { %2309 = vtanh.f32 %v1657_v13 }
 0x917   : > { %v2308_v14 = vpop.eup %2307 }
 0x918   : > { %v2310_v15 = vpop.eup %2309  ;;  %v1662_v16 = vadd.f32 1.0, %v2308_v14 }
 0x919   : > { %v1661_v17 = vadd.f32 1.0, %v2310_v15 }
 0x91a   : > { %v1664_v18 = vmul.f32 0.5, %v1662_v16 }
 0x91b   : > { %v1663_v19 = vmul.f32 0.5, %v1661_v17 }
 0x91c   : > { %v1666_v42 = vmul.f32 %v1664_v18, %v1646_v1  ;;  %v2057_v1 = vld [vmem:[%s2683_s16] ss:$0 sm:$0xff] (!%p2056_p5) }
 0x91d   : > { %v1665_v20 = vmul.f32 %v1663_v19, %v1641_v3 }
 0x91f   : > { %2205 = vmatprep.mubr.msk.f32.mxu0 %vm1682_vm6, %v1665_v20 }
 0x920   : > { %2206 = vmatmul.mubr.msk.f32.vlgmr.msra.gmra.mrb[8].mxu0 %vm1682_vm6, %v1666_v42 }
 0x9f3   : > { %v2207_v21 = vpop.f32.mrb[8].mxu0 }
 0x9f4   : > { %v1761_v22 = vadd.f32 %v2207_v21, %v2053_v40  ;;  %v1755_v23 = vpop.f32.mrb[9].mxu0 }
 0x9f5   : > { %v1756_v24 = vadd.f32 %v2053_v40, %v1755_v23 }
 0x9f6   : > { %v1765_v25 = vadd.f32 %v1761_v22, %v1556_v51  ;;  %v1800_v51 = vsub.s32 3, %v2588_v34  ;;  %v1810_v34 = vld [vmem:[%s2682_s28] sm:$0xff] (!%p2056_p5) }
 0x9f7   : > { %v1764_v26 = vadd.f32 %v1756_v24, %v1555_v49 }
 0x9f8   : > { %v1769_v27 = vsel %vm648_vm1, %v1765_v25, 0.0  ;;  %v1801_v55 = vrot.slane %v2592_v37, %v1800_v51  ;;  %v1811_v37 = vld [vmem:[%s2682_s28 + $0x8] sm:$0xff] (!%p2056_p5) }
 0x9f9   : > { %1770 = vadd.xlane.f32.xlu0 %v1769_v27  ;;  %v1766_v28 = vsel %vm648_vm1, %v1764_v26, 0.0  ;;  %v2259_v62 = vpack.c.bf16 (!%p2056_p5), %v1811_v37, %v1810_v34 }
 0x9fa   : > { %1767 = vadd.xlane.f32.xlu1 %v1766_v28 }
 0x9fb   : > { %2260 = vmatprep.subr.bf16.mxu0 (!%p2056_p5), %v2259_v62 }
 0x9fc   : > { %2262 = vmatpush3.bf16.msra.mxu0 (!%p2056_p5), %v2259_v62 }
 0x9fd   : > { %2264 = vmatprep.subr.bf16.mxu0 (!%p2056_p5), %v2263_v0 }
 0xa00   : > { %2266 = vmatpush3.bf16.msra.mxu0 (!%p2056_p5), %v2263_v0 }
 0xa86   : > { %v1771_v29 = vpop.xlane.xlu0 %1770 }
 0xa87   : > { %v1773_v30 = vmul.f32 0.03125, %v1771_v29  ;;  %v1768_v31 = vpop.xlane.xlu1 %1767 }
 0xa88   : > { %v1772_v32 = vmul.f32 0.03125, %v1768_v31 }
 0xa89   : > { %v1775_v33 = vsub.f32 %v1765_v25, %v1773_v30 }
 0xa8a   : > { %v1774_v35 = vsub.f32 %v1764_v26, %v1772_v32 }
 0xa8b   : > { %v1777_v36 = vmul.f32 %v1775_v33, %v1775_v33 }
 0xa8c   : > { %v1776_v38 = vmul.f32 %v1774_v35, %v1774_v35 }
 0xa8d   : > { %v1781_v39 = vsel %vm648_vm1, %v1777_v36, 0.0 }
 0xa8e   : > { %1782 = vadd.xlane.f32.xlu0 %v1781_v39  ;;  %v1778_v41 = vsel %vm648_vm1, %v1776_v38, 0.0 }
 0xa8f   : > { %1779 = vadd.xlane.f32.xlu1 %v1778_v41 }
 0xb1b   : > { %v1783_v44 = vpop.xlane.xlu0 %1782 }
 0xb1c   : > { %v1785_v45 = vmul.f32 0.03125, %v1783_v44  ;;  %v1780_v46 = vpop.xlane.xlu1 %1779 }
 0xb1d   : > { %v1784_v47 = vmul.f32 0.03125, %v1780_v46 }
 0xb1e   : > { %v1787_v48 = vadd.f32 1e-05, %v1785_v45 }
 0xb1f   : > { %v1786_v49 = vadd.f32 1e-05, %v1784_v47 }
 0xb20   : > { %2311 = vrsqrt.f32 %v1787_v48 }
 0xb21   : > { %2313 = vrsqrt.f32 %v1786_v49 }
 0xb2a   : > { %v2312_v53 = vpop.eup %2311 }
 0xb2b   : > { %v2314_v54 = vpop.eup %2313  ;;  %v1791_v56 = vmul.f32 %v2312_v53, %v1775_v33 }
 0xb2c   : > { %v1790_v57 = vmul.f32 %v2314_v54, %v1774_v35  ;;  %1809 = sbr.rel (%p2056_p5) target bundleno = 3083 (0xc0b), region = 84 }
 0xb2d   : > { %v1797_v58 = vmul.f32 %v1795_v52, %v1791_v56 }
 0xb2e   : > { %v1796_v59 = vmul.f32 %v1795_v52, %v1790_v57 }
 0xb2f   : > { %v1803_v60 = vadd.f32 %v1801_v55, %v1797_v58 }
 0xb30   : > { %v1802_v43 = vadd.f32 %v1801_v55, %v1796_v59 }
 0xb31   : > { %1805 = vst.msk [vmem:[#allocation2 + $0x8] sm:$0xff] %vm648_vm1, %v1803_v60 }
 0xb32   : > { %1804 = vst.msk [vmem:[#allocation2] sm:$0xff] %vm648_vm1, %v1802_v43  ;;  %2216 = vmatprep.mubr.msk.f32.mxu0 (!%p2056_p5), %vm648_vm1, %v1802_v43 }
 0xb33   : > { %2217 = vmatmul.mubr.msk.f32.vlgmr.msra.gmra.mrb[0].mxu0 %vm648_vm1, %v1803_v60 }
 0xc06   : > { %v2218_v2 = vpop.f32.mrb[0].mxu0 }
 0xc07   : > { %v1899_v3 = vadd.f32 %v2218_v2, %v2057_v1  ;;  %v1893_v4 = vpop.f32.mrb[1].mxu0 }
 0xc08   : > { %v1894_v5 = vadd.f32 %v2057_v1, %v1893_v4 }
 0xc09   : > { %1903 = vst [vmem:[%s2684_s25 + $0x8] sm:$0xff] %v1899_v3 }
 0xc0a   : > { %1902 = vst [vmem:[%s2684_s25] sm:$0xff] %v1894_v5 }
 0xc0b PF: > { %s2685_s17 = sld [smem:[#allocation4_spill]] }
 0xc11   : > { %s24_s29 = sadd.s32 1, %s2685_s17  }
 0xc12   : > { %p21_p6 = scmp.ge.s32.totalorder %s24_s29, 4  }
 0xc14   :  { %23 = sbr.rel (!%p21_p6) target bundleno = 6 (0x6), region = 134 }

</bundles_post_ra>
